<compile_context>
chip_gen: v6e
topology: v6e:2x2x1
jax: 0.10.0
libtpu: 0.0.40
codegen_flags: <defaults>
</compile_context>

<pallas_src>
import functools

import jax
import jax.numpy as jnp
from jax.experimental import pallas as pl
from jax.experimental.pallas import tpu as pltpu


def _stdf_asl_kernel(w_ref, tpow_ref, alphas_ref, inv_alphas_ref, o_ref, *, nmixs):
    # w_ref:    (ndims, TQ)   queries on the 128-lane axis, dims on sublanes
    # tpow_ref: (ndims, nmixs) precomputed theta_m ** (1/alpha_m), transposed
    # alphas_ref / inv_alphas_ref: (nmixs,) f32 scalars in SMEM
    # o_ref:    (1, TQ)       lane-dense output row

    log_w = jnp.log(w_ref[...])                          # one EUP pass per tile
    tpow = tpow_ref[...]                                 # (ndims, nmixs), tiny

    acc = jnp.zeros(o_ref.shape, jnp.float32)            # (1, TQ)

    # nmixs is tiny and static -> unrolled loop, everything stays 2-D/lane-dense.
    for m in range(nmixs):
        a_m = alphas_ref[m]                              # scalar (SMEM)
        inv_a_m = inv_alphas_ref[m]                      # scalar (SMEM)
        w_pow = jnp.exp(log_w * inv_a_m)                 # w ** (1/a_m)   (EUP)
        theta_col = tpow[:, m:m + 1]                     # (ndims, 1) = theta_m**(1/a_m)
        # sum_d  w^(1/a_m) * theta_m^(1/a_m)  ->  (1, TQ)  (sublane reduce)
        s = jnp.sum(w_pow * theta_col, axis=0, keepdims=True)
        acc = acc + jnp.exp(a_m * jnp.log(s))            # s ** a_m

    o_ref[...] = acc


def stdf_asl_forward(w, alphas_ps, thetas_ps, *, tq=None):
    """Pallas implementation of stdfASL.forward.

    w:         (nquery, ndims) float32, strictly positive
    alphas_ps: (nmixs,)        float32   (logit-space alphas parameter)
    thetas_ps: (nmixs, ndims)  float32   (log-space thetas parameter)
    returns:   (nquery,)       float32
    """
    w = jnp.asarray(w, jnp.float32)
    nquery, ndims = w.shape
    nmixs = thetas_ps.shape[0]
    assert alphas_ps.shape == (nmixs,)
    assert thetas_ps.shape == (nmixs, ndims)

    # ---- hoisted, loop-invariant parameter transforms ----------------------
    alphas = jax.nn.sigmoid(alphas_ps).astype(jnp.float32)            # (nmixs,)
    inv_alphas = (1.0 / alphas).astype(jnp.float32)                   # (nmixs,)
    thetas = jax.nn.softmax(thetas_ps.astype(jnp.float32), axis=0)    # (nmixs, ndims)
    # (w*theta)^(1/a) = w^(1/a) * theta^(1/a): precompute theta^(1/a), stored
    # transposed so each mixture is a (ndims, 1) column in the kernel layout.
    theta_pow_t = jnp.transpose(thetas ** inv_alphas[:, None])        # (ndims, nmixs)

    # ---- tile size: queries on the 128-lane axis ---------------------------
    if tq is None:
        nq128 = ((nquery + 127) // 128) * 128
        # Conservative VMEM budget for the double-buffered (ndims, tq) input
        # tile: fits v5e's 16 MiB scoped default and v7x's 64 MiB physical.
        vmem_budget = 8 * 1024 * 1024
        tq_cap = max(128, (vmem_budget // (2 * ndims * 4)) // 128 * 128)
        tq = min(2048, tq_cap, nq128)
        # Prefer >= 2 grid steps when there is enough work so both v7x
        # TensorCores get a share (grid axis is "parallel").
        if nq128 >= 2 * 128 and nq128 // tq < 2:
            tq = max(128, ((nq128 // 2) // 128) * 128)
    assert tq % 128 == 0

    nq_pad = ((nquery + tq - 1) // tq) * tq

    # Queries -> lane axis.  Pad with 1.0 (positive) so padded lanes stay finite;
    # padded outputs are sliced off below.
    w_t = jnp.transpose(w)                                            # (ndims, nquery)
    if nq_pad != nquery:
        w_t = jnp.pad(w_t, ((0, 0), (0, nq_pad - nquery)), constant_values=1.0)

    kernel = functools.partial(_stdf_asl_kernel, nmixs=nmixs)

    out2d = pl.pallas_call(
        kernel,
        out_shape=jax.ShapeDtypeStruct((1, nq_pad), jnp.float32),
        grid_spec=pltpu.PrefetchScalarGridSpec(
            num_scalar_prefetch=0,
            grid=(nq_pad // tq,),
            in_specs=[
                # w tile: (ndims, tq), lane-dense over queries
                pl.BlockSpec((ndims, tq), lambda i: (0, i)),
                # theta^(1/alpha) (tiny, resident across all grid steps)
                pl.BlockSpec((ndims, nmixs), lambda i: (0, 0)),
                # per-mixture scalars live in SMEM
                pl.BlockSpec(memory_space=pltpu.MemorySpace.SMEM),
                pl.BlockSpec(memory_space=pltpu.MemorySpace.SMEM),
            ],
            # lane-dense output row (no lane-width-1 masked stores)
            out_specs=pl.BlockSpec((1, tq), lambda i: (0, i)),
        ),
        compiler_params=pltpu.CompilerParams(
            dimension_semantics=("parallel",),
            vmem_limit_bytes=32 * 1024 * 1024,
        ),
    )(w_t, theta_pow_t, alphas, inv_alphas)

    return out2d.reshape(nq_pad)[:nquery]


def stdf_asl_reference(w, alphas_ps, thetas_ps):
    """Pure-JAX reference matching the PyTorch forward exactly."""
    alphas = jax.nn.sigmoid(alphas_ps)               # (nmixs,)
    thetas = jax.nn.softmax(thetas_ps, axis=0)       # (nmixs, ndims)
    wtheta = w[:, :, None] * thetas.T[None, :, :]    # (nq, nd, nm)
    ret_m = jnp.sum(wtheta ** (1.0 / alphas[None, None, :]), axis=1) ** alphas[None, :]
    return jnp.sum(ret_m, axis=1)


if __name__ == "__main__":
    key = jax.random.PRNGKey(0)
    k_a, k_t, k_w = jax.random.split(key, 3)

    nmixs, ndims, nquery = 4, 8, 1024

    # Deterministic "module init": alphas in (0,1), thetas > 0, then stored in
    # the same parameterization as the PyTorch module (logit / log space).
    alphas = jax.random.uniform(k_a, (nmixs,), jnp.float32, 0.2, 0.8)
    thetas = jax.random.uniform(k_t, (nmixs, ndims), jnp.float32, 0.5, 1.5)
    alphas_ps = jnp.log(alphas / (1.0 - alphas))
    thetas_ps = jnp.log(thetas)

    # Query weights (positive, as expected for this stable-law mixture).
    w = jax.random.uniform(k_w, (nquery, ndims), jnp.float32, 0.1, 1.0)

    out = stdf_asl_forward(w, alphas_ps, thetas_ps)
    out = jax.block_until_ready(out)

    ref = stdf_asl_reference(w, alphas_ps, thetas_ps)
    assert out.shape == (nquery,)
    assert jnp.allclose(out, ref, rtol=1e-4, atol=1e-6), (out, ref)

    print("KERNEL_OK")
</pallas_src>

<mosaic_0001>
module attributes {stable_mosaic.version = 11 : i64} {
  func.func @_stdf_asl_kernel(%arg0: i32, %arg1: memref<8x512xf32, #tpu.memory_space<vmem>>, %arg2: memref<8x4xf32, #tpu.memory_space<vmem>>, %arg3: memref<4xf32, #tpu.memory_space<smem>>, %arg4: memref<4xf32, #tpu.memory_space<smem>>, %arg5: memref<1x512xf32, #tpu.memory_space<vmem>>) attributes {dimension_semantics = [#tpu.dimension_semantics<parallel>], iteration_bounds = array<i64: 2>, scalar_prefetch = 0 : i64, scratch_operands = 0 : i64, tpu.core_type = #tpu.core_type<tc>, window_params = [{transform_indices = @transform_0, window_bounds = array<i64: 8, 512>}, {pipeline_mode = #tpu.pipeline_mode<synchronous>, transform_indices = @transform_1, window_bounds = array<i64: 8, 4>}, {transform_indices = @transform_2, window_bounds = array<i64: 4>}, {transform_indices = @transform_3, window_bounds = array<i64: 4>}, {transform_indices = @transform_4, window_bounds = array<i64: 1, 512>}]} {
    %c0 = arith.constant 0 : index
    %c0_0 = arith.constant 0 : index
    %0 = vector.load %arg1[%c0, %c0_0] : memref<8x512xf32, #tpu.memory_space<vmem>>, vector<8x512xf32>
    %1 = math.log %0 : vector<8x512xf32>
    %c0_1 = arith.constant 0 : index
    %c0_2 = arith.constant 0 : index
    %2 = vector.load %arg2[%c0_1, %c0_2] : memref<8x4xf32, #tpu.memory_space<vmem>>, vector<8x4xf32>
    %cst = arith.constant 0.000000e+00 : f32
    %3 = vector.broadcast %cst : f32 to vector<1x512xf32>
    %c0_3 = arith.constant 0 : index
    %4 = memref.load %arg3[%c0_3] : memref<4xf32, #tpu.memory_space<smem>>
    %c0_4 = arith.constant 0 : index
    %5 = memref.load %arg4[%c0_4] : memref<4xf32, #tpu.memory_space<smem>>
    %6 = vector.broadcast %5 : f32 to vector<8x512xf32>
    %7 = arith.mulf %1, %6 : vector<8x512xf32>
    %8 = math.exp %7 : vector<8x512xf32>
    %9 = vector.extract_strided_slice %2 {offsets = [0, 0], sizes = [8, 1], strides = [1, 1]} : vector<8x4xf32> to vector<8x1xf32>
    %10 = vector.broadcast %9 : vector<8x1xf32> to vector<8x512xf32>
    %11 = arith.mulf %8, %10 : vector<8x512xf32>
    %cst_5 = arith.constant dense<0.000000e+00> : vector<512xf32>
    %12 = vector.multi_reduction <add>, %11, %cst_5 [0] : vector<8x512xf32> to vector<512xf32>
    %13 = vector.shape_cast %12 : vector<512xf32> to vector<1x512xf32>
    %14 = math.log %13 : vector<1x512xf32>
    %15 = vector.broadcast %4 : f32 to vector<1x512xf32>
    %16 = arith.mulf %15, %14 : vector<1x512xf32>
    %17 = math.exp %16 : vector<1x512xf32>
    %18 = arith.addf %3, %17 : vector<1x512xf32>
    %c1 = arith.constant 1 : index
    %19 = memref.load %arg3[%c1] : memref<4xf32, #tpu.memory_space<smem>>
    %c1_6 = arith.constant 1 : index
    %20 = memref.load %arg4[%c1_6] : memref<4xf32, #tpu.memory_space<smem>>
    %21 = vector.broadcast %20 : f32 to vector<8x512xf32>
    %22 = arith.mulf %1, %21 : vector<8x512xf32>
    %23 = math.exp %22 : vector<8x512xf32>
    %24 = vector.extract_strided_slice %2 {offsets = [0, 1], sizes = [8, 1], strides = [1, 1]} : vector<8x4xf32> to vector<8x1xf32>
    %25 = vector.broadcast %24 : vector<8x1xf32> to vector<8x512xf32>
    %26 = arith.mulf %23, %25 : vector<8x512xf32>
    %cst_7 = arith.constant dense<0.000000e+00> : vector<512xf32>
    %27 = vector.multi_reduction <add>, %26, %cst_7 [0] : vector<8x512xf32> to vector<512xf32>
    %28 = vector.shape_cast %27 : vector<512xf32> to vector<1x512xf32>
    %29 = math.log %28 : vector<1x512xf32>
    %30 = vector.broadcast %19 : f32 to vector<1x512xf32>
    %31 = arith.mulf %30, %29 : vector<1x512xf32>
    %32 = math.exp %31 : vector<1x512xf32>
    %33 = arith.addf %18, %32 : vector<1x512xf32>
    %c2 = arith.constant 2 : index
    %34 = memref.load %arg3[%c2] : memref<4xf32, #tpu.memory_space<smem>>
    %c2_8 = arith.constant 2 : index
    %35 = memref.load %arg4[%c2_8] : memref<4xf32, #tpu.memory_space<smem>>
    %36 = vector.broadcast %35 : f32 to vector<8x512xf32>
    %37 = arith.mulf %1, %36 : vector<8x512xf32>
    %38 = math.exp %37 : vector<8x512xf32>
    %39 = vector.extract_strided_slice %2 {offsets = [0, 2], sizes = [8, 1], strides = [1, 1]} : vector<8x4xf32> to vector<8x1xf32>
    %40 = vector.broadcast %39 : vector<8x1xf32> to vector<8x512xf32>
    %41 = arith.mulf %38, %40 : vector<8x512xf32>
    %cst_9 = arith.constant dense<0.000000e+00> : vector<512xf32>
    %42 = vector.multi_reduction <add>, %41, %cst_9 [0] : vector<8x512xf32> to vector<512xf32>
    %43 = vector.shape_cast %42 : vector<512xf32> to vector<1x512xf32>
    %44 = math.log %43 : vector<1x512xf32>
    %45 = vector.broadcast %34 : f32 to vector<1x512xf32>
    %46 = arith.mulf %45, %44 : vector<1x512xf32>
    %47 = math.exp %46 : vector<1x512xf32>
    %48 = arith.addf %33, %47 : vector<1x512xf32>
    %c3 = arith.constant 3 : index
    %49 = memref.load %arg3[%c3] : memref<4xf32, #tpu.memory_space<smem>>
    %c3_10 = arith.constant 3 : index
    %50 = memref.load %arg4[%c3_10] : memref<4xf32, #tpu.memory_space<smem>>
    %51 = vector.broadcast %50 : f32 to vector<8x512xf32>
    %52 = arith.mulf %1, %51 : vector<8x512xf32>
    %53 = math.exp %52 : vector<8x512xf32>
    %54 = vector.extract_strided_slice %2 {offsets = [0, 3], sizes = [8, 1], strides = [1, 1]} : vector<8x4xf32> to vector<8x1xf32>
    %55 = vector.broadcast %54 : vector<8x1xf32> to vector<8x512xf32>
    %56 = arith.mulf %53, %55 : vector<8x512xf32>
    %cst_11 = arith.constant dense<0.000000e+00> : vector<512xf32>
    %57 = vector.multi_reduction <add>, %56, %cst_11 [0] : vector<8x512xf32> to vector<512xf32>
    %58 = vector.shape_cast %57 : vector<512xf32> to vector<1x512xf32>
    %59 = math.log %58 : vector<1x512xf32>
    %60 = vector.broadcast %49 : f32 to vector<1x512xf32>
    %61 = arith.mulf %60, %59 : vector<1x512xf32>
    %62 = math.exp %61 : vector<1x512xf32>
    %63 = arith.addf %48, %62 : vector<1x512xf32>
    %c0_12 = arith.constant 0 : index
    %c0_13 = arith.constant 0 : index
    %64 = vector.load %arg5[%c0_12, %c0_13] : memref<1x512xf32, #tpu.memory_space<vmem>>, vector<1x512xf32>
    tpu.vector_store %arg5[%c0_12, %c0_13], %63 {strides = array<i32>} : memref<1x512xf32, #tpu.memory_space<vmem>>, vector<1x512xf32>,
    return
  }
  func.func @transform_0(%arg0: i32) -> (i32, i32) {
    %c0_i32 = arith.constant 0 : i32
    %c0_i32_0 = arith.constant 0 : i32
    return %c0_i32, %arg0 : i32, i32
  }
  func.func @transform_1(%arg0: i32) -> (i32, i32) {
    %c0_i32 = arith.constant 0 : i32
    %c0_i32_0 = arith.constant 0 : i32
    %c0_i32_1 = arith.constant 0 : i32
    return %c0_i32, %c0_i32_0 : i32, i32
  }
  func.func @transform_2(%arg0: i32) -> i32 {
    %c0_i32 = arith.constant 0 : i32
    %c0_i32_0 = arith.constant 0 : i32
    return %c0_i32 : i32
  }
  func.func @transform_3(%arg0: i32) -> i32 {
    %c0_i32 = arith.constant 0 : i32
    %c0_i32_0 = arith.constant 0 : i32
    return %c0_i32 : i32
  }
  func.func @transform_4(%arg0: i32) -> (i32, i32) {
    %c0_i32 = arith.constant 0 : i32
    %c0_i32_0 = arith.constant 0 : i32
    return %c0_i32, %arg0 : i32, i32
  }
}

</mosaic_0001>

<bundles_post_ra>
// kernel: tpu_custom_call.1
= control target key start
LH: loop header
LB: loop body
LE: loop exit
PB: predicated region body
PF: predicated region fallthrough
CT: control target
= control target key end

     0   :  { %9 = vsyncpa [#allocation3], 0  ;;  %s1226_s0 = inlined_call_operand.hbm [shape: f32[8,1024], index: 0, kind: input, shape index: {}]   ;;  %s1227_s1 = inlined_call_operand.vmem [shape: f32[8,4], index: 1, kind: input, shape index: {}]   ;;  %s1228_s2 = inlined_call_operand.vmem [shape: f32[4], index: 2, kind: input, shape index: {}]   ;;  %s1229_s3 = inlined_call_operand.vmem [shape: f32[4], index: 3, kind: input, shape index: {}]   ;;  %s1230_s4 = inlined_call_operand.hbm [shape: f32[1,1024], index: 4, kind: output, shape index: {}]  }
   0x1   :  { %11 = vsyncpa [#allocation3 + $0x1], 0 }
   0x2   :  { %12 = vsyncpa [#allocation5], 0 }
   0x3   :  { %13 = vsyncpa [#allocation8], 0 }
   0x4   :  { %14 = vsyncpa [#allocation4], 0 }
   0x5   :  { %16 = vsyncpa [#allocation4 + $0x1], 0  ;;  %s1059_s15 = smov 0   ;;  %s1061_s16 = smov 0  }
   0x6   :  { %s1063_s17 = smov 0   ;;  %s1065_s18 = smov 0  }
   0x7 LB: > { %s1080_s19 = sadd.s32 4294967295, %s1023_s18   ;;  %s686_s20 = sadd.s32 4294967294, %s1023_s18   ;;  %s1023_s18 = sphi %s1065_s18, %s1254_s18   ;;  %s1019_s17 = sphi %s1063_s17, %s1253_s17   ;;  %s1015_s16 = sphi %s1061_s16, %s1252_s16   ;;  %s1011_s15 = sphi %s1059_s15, %s1251_s15  }
   0x8   : > { %p42_p0 = scmp.ne.s32.totalorder %s1015_s16, %s1011_s15  ;;  %p1231_p1 = scmp.eq.s32.totalorder %s1080_s19, 0 }
   0x9   : > { %p135_p3 = scmp.eq.s32.totalorder %s686_s20, 1  ;;  %p687_p5 = scmp.ge.s32.totalorder %s1023_s18, 1 }
   0xa   : > { %p1089_p4 = por %p1231_p1, %p42_p0  ;;  %p142_p7 = scmp.lt.s32.totalorder %s1023_s18, 3 }
   0xb   : > { %p1094_p6 = por %p135_p3, %p42_p0  ;;  %s158_s25 = sshll.u32 %s1228_s2, 4  ;;  %s159_s25 = int_to_ptr.vmem [resolvable:$true] %s158_s25 }
   0xc   : > { %s1235_s21 = scalar_select %p1089_p4, 1, 0 }
   0xd   : > { %s1236_s22 = scalar_select %p1094_p6, 1, 0 }
   0xe   : > { %p1102_p8 = pnand %p687_p5, %p142_p7  ;;  %s169_s29 = sshll.u32 %s1229_s3, 4  ;;  %s170_s29 = int_to_ptr.vmem [resolvable:$true] %s169_s29 }
   0xf   : > { %s1119_s5 = sadd.s32 1, %s1023_s18   ;;  %s893_s7 = scalar_lea.vmem %s159_s25, 16 }
  0x10   : > { %s1237_s26 = scalar_select %p1102_p8, 1, 0 }
  0x11   : > { %p724_p10 = pneg %p1102_p8  ;;  %s26_s6 = ssub.s32 %s1023_s18, %s1119_s5 }
  0x12   : > { %p894_p12 = scmp.ne.s32.totalorder %s159_s25, %s893_s7  ;;  %p901_p5 = scmp.lt.s32.totalorder %s159_s25, %s159_s25 }
  0x13   : > { %p1114_p11 = pnand %p724_p10, %p1231_p1  ;;  %p902_p7 = scmp.lt.s32.totalorder %s893_s7, %s893_s7 }
  0x15   : > { %p895_p13 = pneg %p1114_p11  ;;  %p903_p9 = por %p902_p7, %p901_p5 }
  0x17   : > { %p896_p0 = pnand %p895_p13, %p894_p12 }
  0x19   : > { %p897_p3 = pneg %p896_p0 }
  0x1b   : > { %p904_p2 = pnand %p903_p9, %p897_p3 }
  0x1d   : > { %907 = shalt.err (!%p904_p2)
}
  0x1e   : > { %s1025_s8 = smov [#allocation6]   ;;  %s908_s9 = scalar_lea.vmem %s170_s29, 16 }
  0x1f   : > { %727 = dma.vmem_to_smem (!%p1114_p11), %s159_s25, 16, %s1025_s8, [#allocation5]  }
  0x20   : > { %p909_p10 = scmp.ne.s32.totalorder %s170_s29, %s908_s9  ;;  %p916_p4 = scmp.lt.s32.totalorder %s170_s29, %s170_s29 }
  0x21   : > { %p917_p8 = scmp.lt.s32.totalorder %s908_s9, %s908_s9 }
  0x22   : > { %p911_p1 = pnand %p909_p10, %p895_p13 }
  0x23   : > { %p918_p12 = por %p917_p8, %p916_p4 }
  0x24   : > { %p912_p6 = pneg %p911_p1 }
  0x26   : > { %p919_p0 = pnand %p918_p12, %p912_p6 }
  0x28   : > { %922 = shalt.err (!%p919_p0)
}
  0x29   : > { %s1026_s10 = smov [#allocation7]   ;;  %p27_p2 = scmp.eq.s32.totalorder %s26_s6, 0 }
  0x2a   : > { %730 = dma.vmem_to_smem (!%p1114_p11), %s170_s29, 16, %s1026_s10, [#allocation8]  }
  0x2b   : > { %s29_s11 = sadd.s32 1, %s1019_s17  ;;  %p36_p1 = scmp.ne.s32.totalorder %s1019_s17, %s1015_s16 }
  0x2c   : > { %p37_p9 = scmp.eq.s32.totalorder %s1023_s18, 0  ;;  %p1239_p6 = scmp.eq.s32.totalorder %s1080_s19, 1 }
  0x2d   : > { %s1134_s12 = scalar_select %p27_p2, %s1019_s17, %s29_s11  }
  0x2e   : > { %p38_p4 = por %p37_p9, %p36_p1  ;;  %p1138_p8 = por %p1239_p6, %p36_p1 }
  0x2f   : > { %p741_p13 = scmp.lt.s32.totalorder %s1023_s18, 2  ;;  %s180_s14 = sand.u32 1, %s1019_s17  }
  0x30   : > { %s1240_s13 = scalar_select %p1138_p8, 1, 0 }
  0x31   : > { %s691_s20 = sshll.u32 %s180_s14, 5  ;;  %s710_s23 = sshll.u32 %s1023_s18, 9 }
  0x32   : > { %s1148_s27 = scalar_lea.hbm %s1226_s0, %s710_s23  ;;  %s184_s28 = scalar_lea.vmem [#allocation2], %s691_s20 }
  0x33   : > { %s192_s29 = sshll.u32 %s184_s28, 4  ;;  %p1150_p11 = pnand %p741_p13, %p38_p4  ;;  %s193_s29 = int_to_ptr.vmem [resolvable:$true] %s192_s29 }
  0x34   : > { %s181_s6 = scalar_lea.sflag [#allocation3], %s180_s14  ;;  %s923_s7 = scalar_lea.hbm %s1148_s27, 512 }
  0x35   : > { %p924_p3 = scmp.ne.s32.totalorder %s1148_s27, %s923_s7  ;;  %p925_p5 = pneg %p1150_p11 }
  0x36   : > { %s928_s10 = scalar_lea.hbm %s1226_s0, 1024  ;;  %p929_p12 = scmp.lt.s32.totalorder %s1148_s27, %s1226_s0 }
  0x37   : > { %p926_p7 = pnand %p925_p5, %p924_p3  ;;  %p930_p0 = scmp.lt.s32.totalorder %s928_s10, %s923_s7 }
  0x39   : > { %p927_p10 = pneg %p926_p7  ;;  %p931_p2 = por %p930_p0, %p929_p12 }
  0x3b   : > { %p932_p1 = pnand %p931_p2, %p927_p10 }
  0x3d   : > { %935 = shalt.err (!%p932_p1)
}
  0x3e   : > { %s936_s23 = scalar_lea.vmem %s193_s29, 512  ;;  %s1027_s14 = smov [#allocation2]  }
  0x3f   : > { %p937_p9 = scmp.ne.s32.totalorder %s193_s29, %s936_s23  ;;  %s941_s24 = sshll.u32 %s1027_s14, 4  ;;  %s942_s24 = int_to_ptr.vmem [resolvable:$false] %s941_s24 }
  0x40   : > { %s943_s25 = scalar_lea.vmem %s942_s24, 1024  ;;  %p944_p13 = scmp.lt.s32.totalorder %s193_s29, %s942_s24 }
  0x41   : > { %p939_p4 = pnand %p937_p9, %p925_p5  ;;  %p945_p3 = scmp.lt.s32.totalorder %s943_s25, %s936_s23 }
  0x43   : > { %p940_p6 = pneg %p939_p4  ;;  %p946_p7 = por %p945_p3, %p944_p13 }
  0x45   : > { %p947_p8 = pnand %p946_p7, %p940_p6 }
  0x47   : > { %950 = shalt.err (!%p947_p8)
}
  0x48   : > { %734 = dma.hbm_to_vmem [thread:$0]  (!%p1150_p11), %s1148_s27, 512, %s193_s29, %s181_s6  }
  0x49   : > { %p1242_p10 = scmp.ne.s32.totalorder %s1237_s26, 0 }
  0x4a   : > { %s1171_s28 = sand.u32 (!%p1242_p10), 1, %s1015_s16   ;;  %p1243_p5 = scmp.ne.s32.totalorder (!%p1242_p10), %s1235_s21, 0 }
  0x4b   : > { %201 = sbr.rel (%p1242_p10) target bundleno = 313 (0x139), region = 36  ;;  %s695_s7 = sshll.u32 (!%p1242_p10), %s1171_s28, 5 }
  0x4c   : > { %s204_s8 = scalar_lea.sflag (!%p1242_p10), [#allocation3], %s1171_s28  ;;  %s207_s9 = scalar_lea.vmem (!%p1242_p10), [#allocation2], %s695_s7 }
  0x50   : > { %994 = dma.done.wait (%p1243_p5), %s204_s8, 512  }
  0x51   : > { %996 = vsyncadd (%p1243_p5), %s204_s8, 4294966784  ;;  %p1244_p8 = scmp.eq.s32.totalorder %s1080_s19, 0 }
  0x53   : > { %998 = dma.done.wait (%p1244_p8), [#allocation5], 16   ;;  %p1245_p11 = pmov %p1244_p8 }
  0x54   : > { %p1246_p12 = pmov %p1244_p8 }
  0x55   : > { %1000 = vsyncadd (%p1245_p11), [#allocation5], 4294967280 }
  0x56   : > { %1002 = dma.done.wait (%p1246_p12), [#allocation8], 16   ;;  %p1247_p0 = pmov %p1244_p8 }
  0x58   : > { %1004 = vsyncadd (%p1247_p0), [#allocation8], 4294967280 }
  0x59   : > { %220 = sfence }
  0x5a   : > { %v255_v0 = vld [vmem:[%s1227_s1] sm:$0xff]  ;;  %v1028_v1 = vmov 2   ;;  %v1029_v2 = vmov 0   ;;  %v1030_v3 = vmov 3   ;;  %v1031_v4 = vmov 1   ;;  %v244_v6 = vld [vmem:[%s207_s9 + $0x8] sm:$0xff] }
  0x5b   : > { %786 = vset.pattern.permute.xlu1 %v1028_v1  ;;  %784 = vset.pattern.permute.xlu0 %v1029_v2  ;;  %v243_v5 = vld [vmem:[%s207_s9] sm:$0xff]  ;;  %v245_v7 = vld [vmem:[%s207_s9 + $0x10] sm:$0xff]  ;;  %v246_v8 = vld [vmem:[%s207_s9 + $0x18] sm:$0xff]  ;;  %s702_s21 = sld [smem:[#allocation7 + $0x2]]  ;;  %s698_s14 = sshll.u32 %s1171_s28, 2 }
  0x5c   : > { %417 = vperm.xlu1 %786, %v255_v0   ;;  %273 = vperm.xlu0 %784, %v255_v0   ;;  %789 = vlog2.f32 %v243_v5  ;;  %s257_s29 = sld [smem:[#allocation7]]  ;;  %s711_s24 = sshll.u32 %s1080_s19, 6 }
  0x5d   : > { %791 = vlog2.f32 %v244_v6  ;;  %s704_s30 = sld [smem:[#allocation7 + $0x3]]  ;;  %s240_s25 = scalar_lea.vmem [#allocation9], %s698_s14 }
  0x5e   : > { %793 = vlog2.f32 %v245_v7  ;;  %s700_s6 = sld [smem:[#allocation7 + $0x1]]  ;;  %s594_s7 = sshll.u32 %s240_s25, 4  ;;  %s595_s7 = int_to_ptr.vmem [resolvable:$true] %s594_s7 }
  0x5f   : > { %795 = vlog2.f32 %v246_v8  ;;  %s701_s10 = sld [smem:[#allocation6 + $0x2]]  ;;  %s592_s26 = scalar_lea.hbm %s1230_s4, %s711_s24 }
  0x60   : > { %787 = vset.pattern.permute.xlu1 %v1030_v3  ;;  %785 = vset.pattern.permute.xlu0 %v1031_v4  ;;  %s256_s11 = sld [smem:[#allocation6]]  ;;  %s580_s27 = scalar_lea.sflag [#allocation4], %s1171_s28 }
  0x61   : > { %489 = vperm.xlu1 %787, %v255_v0   ;;  %345 = vperm.xlu0 %785, %v255_v0   ;;  %v403_v14 = vstv %s702_s21  ;;  %s703_s20 = sld [smem:[#allocation6 + $0x3]]  ;;  %s951_s21 = scalar_lea.vmem %s595_s7, 64 }
  0x62   : > { %v258_v20 = vstv %s257_s29  ;;  %s699_s23 = sld [smem:[#allocation6 + $0x1]]  ;;  %p952_p2 = scmp.ne.s32.totalorder %s595_s7, %s951_s21 }
  0x63   : > { %v475_v35 = vstv %s704_s30  ;;  %p1248_p1 = scmp.ne.s32.totalorder %s1240_s13, 0  ;;  %s1033_s29 = smov [#allocation9]  }
  0x64   : > { %v331_v38 = vstv %s700_s6  ;;  %s955_s30 = sshll.u32 %s1033_s29, 4  ;;  %s956_s30 = int_to_ptr.vmem [resolvable:$false] %s955_s30 }
  0x65   : > { %788 = vset.pattern.permute.xlu0 %v1030_v3  ;;  %p953_p9 = pnand %p952_p2, %p1248_p1  ;;  %s957_s19 = scalar_lea.vmem %s956_s30, 128 }
  0x66   : > { %p958_p6 = scmp.lt.s32.totalorder %s595_s7, %s956_s30  ;;  %p959_p13 = scmp.lt.s32.totalorder %s957_s19, %s951_s21 }
  0x67   : > { %p954_p4 = pneg %p953_p9 }
  0x68   : > { %p960_p3 = por %p959_p13, %p958_p6 }
  0x69   : > { %v790_v9 = vpop.eup %789 }
  0x6a   : > { %v792_v10 = vpop.eup %791  ;;  %v248_v13 = vmul.f32 0.6931472, %v790_v9  ;;  %p961_p7 = pnand %p960_p3, %p954_p4 }
  0x6b   : > { %v794_v11 = vpop.eup %793  ;;  %v250_v15 = vmul.f32 0.6931472, %v792_v10 }
  0x6c   : > { %v796_v12 = vpop.eup %795  ;;  %v252_v16 = vmul.f32 0.6931472, %v794_v11  ;;  %v404_v18 = vmul.f32 %v403_v14, %v248_v13  ;;  %v259_v24 = vmul.f32 %v258_v20, %v248_v13  ;;  %v476_v36 = vmul.f32 %v475_v35, %v248_v13 }
  0x6d   : > { %v254_v17 = vmul.f32 0.6931472, %v796_v12  ;;  %v405_v19 = vmul.f32 %v403_v14, %v250_v15  ;;  %v260_v26 = vmul.f32 %v258_v20, %v250_v15  ;;  %v477_v37 = vmul.f32 %v475_v35, %v250_v15 }
  0x6e   : > { %v406_v21 = vmul.f32 %v403_v14, %v252_v16  ;;  %v408_v23 = vmul.f32 1.442695, %v404_v18  ;;  %v261_v28 = vmul.f32 %v258_v20, %v252_v16  ;;  %v263_v31 = vmul.f32 1.442695, %v259_v24 }
  0x6f   : > { %v407_v22 = vmul.f32 %v403_v14, %v254_v17  ;;  %v410_v25 = vmul.f32 1.442695, %v405_v19  ;;  %v262_v30 = vmul.f32 %v258_v20, %v254_v17  ;;  %v265_v32 = vmul.f32 1.442695, %v260_v26 }
  0x70   : > { %v412_v27 = vmul.f32 1.442695, %v406_v21  ;;  %797 = vpow2.f32 %v408_v23  ;;  %v267_v33 = vmul.f32 1.442695, %v261_v28  ;;  %v478_v39 = vmul.f32 %v475_v35, %v252_v16 }
  0x71   : > { %v414_v29 = vmul.f32 1.442695, %v407_v22  ;;  %799 = vpow2.f32 %v410_v25  ;;  %v269_v34 = vmul.f32 1.442695, %v262_v30  ;;  %v479_v40 = vmul.f32 %v475_v35, %v254_v17 }
  0x72   : > { %801 = vpow2.f32 %v412_v27  ;;  %v480_v41 = vmul.f32 1.442695, %v476_v36  ;;  %v332_v42 = vmul.f32 %v331_v38, %v248_v13  ;;  %v482_v43 = vmul.f32 1.442695, %v477_v37 }
  0x73   : > { %803 = vpow2.f32 %v414_v29  ;;  %v333_v44 = vmul.f32 %v331_v38, %v250_v15  ;;  %v484_v46 = vmul.f32 1.442695, %v478_v39  ;;  %v486_v48 = vmul.f32 1.442695, %v479_v40 }
  0x74   : > { %805 = vpow2.f32 %v263_v31  ;;  %v334_v50 = vmul.f32 %v331_v38, %v252_v16  ;;  %v336_v51 = vmul.f32 1.442695, %v332_v42  ;;  %v335_v53 = vmul.f32 %v331_v38, %v254_v17 }
  0x75   : > { %807 = vpow2.f32 %v265_v32  ;;  %v338_v54 = vmul.f32 1.442695, %v333_v44 }
  0x76   : > { %809 = vpow2.f32 %v267_v33  ;;  %v340_v58 = vmul.f32 1.442695, %v334_v50  ;;  %v342_v61 = vmul.f32 1.442695, %v335_v53 }
  0x77   : > { %811 = vpow2.f32 %v269_v34 }
  0x78   : > { %813 = vpow2.f32 %v480_v41 }
  0x79   : > { %815 = vpow2.f32 %v482_v43 }
  0x7a   : > { %817 = vpow2.f32 %v484_v46 }
  0x7b   : > { %819 = vpow2.f32 %v486_v48 }
  0x7c   : > { %821 = vpow2.f32 %v336_v51 }
  0x7d   : > { %v798_v45 = vpop.eup %797  ;;  %823 = vpow2.f32 %v338_v54 }
  0x7e   : > { %v800_v47 = vpop.eup %799  ;;  %825 = vpow2.f32 %v340_v58 }
  0x7f   : > { %v802_v49 = vpop.eup %801  ;;  %827 = vpow2.f32 %v342_v61 }
  0x80   : > { %v804_v52 = vpop.eup %803 }
  0x81   : > { %v806_v55 = vpop.eup %805 }
  0x82   : > { %v808_v56 = vpop.eup %807 }
  0x83   : > { %v810_v57 = vpop.eup %809 }
  0x84   : > { %v812_v62 = vpop.eup %811 }
  0x85   : > { %v814_v16 = vpop.eup %813 }
  0x86   : > { %v816_v18 = vpop.eup %815 }
  0x87   : > { %v818_v21 = vpop.eup %817 }
  0x88   : > { %v820_v26 = vpop.eup %819 }
  0x89   : > { %v822_v28 = vpop.eup %821 }
  0x8a   : > { %v824_v31 = vpop.eup %823 }
  0x8b   : > { %v826_v43 = vpop.eup %825 }
  0x8c   : > { %v828_v48 = vpop.eup %827 }
  0xd7   : > { %v418_v59 = vpop.permute.xlu1 %417  ;;  %v274_v60 = vpop.permute.xlu0 %273 }
  0xd8   : > { %v420_v63 = vmul.f32 %v798_v45, %v418_v59  ;;  %v421_v0 = vmul.f32 %v800_v47, %v418_v59  ;;  %v422_v1 = vmul.f32 %v802_v49, %v418_v59  ;;  %v423_v2 = vmul.f32 %v804_v52, %v418_v59 }
  0xd9   : > { %v276_v3 = vmul.f32 %v806_v55, %v274_v60  ;;  %v277_v4 = vmul.f32 %v808_v56, %v274_v60  ;;  %v278_v5 = vmul.f32 %v810_v57, %v274_v60  ;;  %v279_v8 = vmul.f32 %v812_v62, %v274_v60 }
  0xda   : > { %v424_v6 = vrot.slane %v420_v63, 4  ;;  %v430_v7 = vrot.slane %v421_v0, 4  ;;  %v436_v9 = vrot.slane %v422_v1, 4  ;;  %v442_v10 = vrot.slane %v423_v2, 4 }
  0xdb   : > { %v280_v12 = vrot.slane %v276_v3, 4  ;;  %v286_v13 = vrot.slane %v277_v4, 4  ;;  %v292_v14 = vrot.slane %v278_v5, 4  ;;  %v298_v17 = vrot.slane %v279_v8, 4 }
  0xdc   : > { %v425_v11 = vadd.f32 %v424_v6, %v420_v63  ;;  %v431_v15 = vadd.f32 %v430_v7, %v421_v0  ;;  %v437_v19 = vadd.f32 %v436_v9, %v422_v1  ;;  %v443_v20 = vadd.f32 %v442_v10, %v423_v2  ;;  %v490_v30 = vpop.permute.xlu1 %489  ;;  %v346_v34 = vpop.permute.xlu0 %345 }
  0xdd   : > { %v281_v23 = vadd.f32 %v280_v12, %v276_v3  ;;  %v287_v24 = vadd.f32 %v286_v13, %v277_v4  ;;  %v293_v25 = vadd.f32 %v292_v14, %v278_v5  ;;  %v299_v29 = vadd.f32 %v298_v17, %v279_v8 }
  0xde   : > { %v426_v22 = vrot.slane %v425_v11, 2  ;;  %v432_v27 = vrot.slane %v431_v15, 2  ;;  %v438_v32 = vrot.slane %v437_v19, 2  ;;  %v444_v33 = vrot.slane %v443_v20, 2 }
  0xdf   : > { %v282_v36 = vrot.slane %v281_v23, 2  ;;  %v288_v37 = vrot.slane %v287_v24, 2  ;;  %v294_v38 = vrot.slane %v293_v25, 2  ;;  %v492_v40 = vmul.f32 %v814_v16, %v490_v30 }
  0xe0   : > { %v427_v35 = vadd.f32 %v426_v22, %v425_v11  ;;  %v433_v39 = vadd.f32 %v432_v27, %v431_v15  ;;  %v493_v41 = vmul.f32 %v816_v18, %v490_v30  ;;  %v494_v42 = vmul.f32 %v818_v21, %v490_v30 }
  0xe1   : > { %v300_v44 = vrot.slane %v299_v29, 2  ;;  %v495_v45 = vmul.f32 %v820_v26, %v490_v30  ;;  %v348_v46 = vmul.f32 %v822_v28, %v346_v34  ;;  %v349_v47 = vmul.f32 %v824_v31, %v346_v34 }
  0xe2   : > { %v439_v49 = vadd.f32 %v438_v32, %v437_v19  ;;  %v496_v50 = vrot.slane %v492_v40, 4  ;;  %v502_v51 = vrot.slane %v493_v41, 4  ;;  %v508_v52 = vrot.slane %v494_v42, 4 }
  0xe3   : > { %v445_v53 = vadd.f32 %v444_v33, %v443_v20  ;;  %v283_v54 = vadd.f32 %v282_v36, %v281_v23  ;;  %v289_v55 = vadd.f32 %v288_v37, %v287_v24  ;;  %v514_v56 = vrot.slane %v495_v45, 4 }
  0xe4   : > { %v428_v57 = vrot.slane %v427_v35, 1  ;;  %v434_v58 = vrot.slane %v433_v39, 1  ;;  %v497_v59 = vadd.f32 %v496_v50, %v492_v40  ;;  %v350_v60 = vmul.f32 %v826_v43, %v346_v34 }
  0xe5   : > { %v503_v61 = vadd.f32 %v502_v51, %v493_v41  ;;  %v351_v62 = vmul.f32 %v828_v48, %v346_v34  ;;  %v352_v63 = vrot.slane %v348_v46, 4  ;;  %v358_v0 = vrot.slane %v349_v47, 4 }
  0xe6   : > { %v440_v1 = vrot.slane %v439_v49, 1  ;;  %v295_v2 = vadd.f32 %v294_v38, %v293_v25  ;;  %v301_v3 = vadd.f32 %v300_v44, %v299_v29  ;;  %v509_v4 = vadd.f32 %v508_v52, %v494_v42 }
  0xe7   : > { %v446_v5 = vrot.slane %v445_v53, 1  ;;  %v284_v6 = vrot.slane %v283_v54, 1  ;;  %v290_v7 = vrot.slane %v289_v55, 1  ;;  %v515_v8 = vadd.f32 %v514_v56, %v495_v45 }
  0xe8   : > { %v429_v9 = vadd.f32 %v428_v57, %v427_v35  ;;  %v498_v10 = vrot.slane %v497_v59, 2  ;;  %v353_v11 = vadd.f32 %v352_v63, %v348_v46  ;;  %v364_v12 = vrot.slane %v350_v60, 4 }
  0xe9   : > { %v435_v13 = vadd.f32 %v434_v58, %v433_v39  ;;  %v504_v14 = vrot.slane %v503_v61, 2  ;;  %v359_v15 = vadd.f32 %v358_v0, %v349_v47  ;;  %v370_v16 = vrot.slane %v351_v62, 4 }
  0xea   : > { %v441_v17 = vadd.f32 %v440_v1, %v439_v49  ;;  %v296_v18 = vrot.slane %v295_v2, 1  ;;  %v510_v19 = vrot.slane %v509_v4, 2  ;;  %v365_v20 = vadd.f32 %v364_v12, %v350_v60 }
  0xeb   : > { %v447_v21 = vadd.f32 %v446_v5, %v445_v53  ;;  %v302_v22 = vrot.slane %v301_v3, 1  ;;  %v516_v23 = vrot.slane %v515_v8, 2  ;;  %v371_v24 = vadd.f32 %v370_v16, %v351_v62 }
  0xec   : > { %829 = vlog2.f32 %v429_v9  ;;  %v285_v25 = vadd.f32 %v284_v6, %v283_v54  ;;  %v499_v26 = vadd.f32 %v498_v10, %v497_v59  ;;  %v354_v27 = vrot.slane %v353_v11, 2 }
  0xed   : > { %831 = vlog2.f32 %v435_v13  ;;  %v291_v28 = vadd.f32 %v290_v7, %v289_v55  ;;  %v505_v29 = vadd.f32 %v504_v14, %v503_v61  ;;  %v360_v30 = vrot.slane %v359_v15, 2 }
  0xee   : > { %833 = vlog2.f32 %v441_v17  ;;  %v297_v31 = vadd.f32 %v296_v18, %v295_v2  ;;  %v511_v32 = vadd.f32 %v510_v19, %v509_v4  ;;  %v366_v33 = vrot.slane %v365_v20, 2 }
  0xef   : > { %835 = vlog2.f32 %v447_v21  ;;  %v303_v34 = vadd.f32 %v302_v22, %v301_v3  ;;  %v517_v35 = vadd.f32 %v516_v23, %v515_v8  ;;  %v372_v36 = vrot.slane %v371_v24, 2 }
  0xf0   : > { %837 = vlog2.f32 %v285_v25  ;;  %v500_v37 = vrot.slane %v499_v26, 1  ;;  %v355_v38 = vadd.f32 %v354_v27, %v353_v11  ;;  %v506_v39 = vrot.slane %v505_v29, 1 }
  0xf1   : > { %839 = vlog2.f32 %v291_v28  ;;  %v361_v40 = vadd.f32 %v360_v30, %v359_v15  ;;  %v512_v41 = vrot.slane %v511_v32, 1  ;;  %v367_v42 = vadd.f32 %v366_v33, %v365_v20 }
  0xf2   : > { %841 = vlog2.f32 %v297_v31  ;;  %v518_v43 = vrot.slane %v517_v35, 1  ;;  %v373_v44 = vadd.f32 %v372_v36, %v371_v24  ;;  %v501_v45 = vadd.f32 %v500_v37, %v499_v26 }
  0xf3   : > { %843 = vlog2.f32 %v303_v34  ;;  %v356_v46 = vrot.slane %v355_v38, 1  ;;  %v507_v47 = vadd.f32 %v506_v39, %v505_v29  ;;  %v362_v48 = vrot.slane %v361_v40, 1 }
  0xf4   : > { %v513_v49 = vadd.f32 %v512_v41, %v511_v32  ;;  %v368_v50 = vrot.slane %v367_v42, 1  ;;  %v519_v51 = vadd.f32 %v518_v43, %v517_v35  ;;  %v374_v52 = vrot.slane %v373_v44, 1 }
  0xf5   : > { %845 = vlog2.f32 %v501_v45  ;;  %v357_v53 = vadd.f32 %v356_v46, %v355_v38  ;;  %v363_v55 = vadd.f32 %v362_v48, %v361_v40  ;;  %v456_v63 = vstv %s701_s10 }
  0xf6   : > { %847 = vlog2.f32 %v507_v47  ;;  %v369_v57 = vadd.f32 %v368_v50, %v367_v42  ;;  %v375_v59 = vadd.f32 %v374_v52, %v373_v44  ;;  %v312_v9 = vstv %s256_s11 }
  0xf7   : > { %849 = vlog2.f32 %v513_v49  ;;  %v528_v28 = vstv %s703_s20  ;;  %v384_v33 = vstv %s699_s23 }
  0xf8   : > { %851 = vlog2.f32 %v519_v51 }
  0xf9   : > { %v830_v54 = vpop.eup %829  ;;  %853 = vlog2.f32 %v357_v53 }
  0xfa   : > { %v832_v56 = vpop.eup %831  ;;  %v449_v61 = vmul.f32 0.6931472, %v830_v54  ;;  %855 = vlog2.f32 %v363_v55 }
  0xfb   : > { %v834_v58 = vpop.eup %833  ;;  %v451_v0 = vmul.f32 0.6931472, %v832_v56  ;;  %857 = vlog2.f32 %v369_v57 }
  0xfc   : > { %v836_v60 = vpop.eup %835  ;;  %v453_v2 = vmul.f32 0.6931472, %v834_v58  ;;  %859 = vlog2.f32 %v375_v59  ;;  %v457_v6 = vmul.f32 %v456_v63, %v449_v61 }
  0xfd   : > { %v838_v62 = vpop.eup %837  ;;  %v455_v4 = vmul.f32 0.6931472, %v836_v60  ;;  %v458_v8 = vmul.f32 %v456_v63, %v451_v0 }
  0xfe   : > { %v840_v1 = vpop.eup %839  ;;  %v305_v7 = vmul.f32 0.6931472, %v838_v62  ;;  %v459_v11 = vmul.f32 %v456_v63, %v453_v2  ;;  %v461_v15 = vmul.f32 1.442695, %v457_v6  ;;  %v554_v6 = vlaneseq }
  0xff   : > { %v842_v3 = vpop.eup %841  ;;  %v307_v10 = vmul.f32 0.6931472, %v840_v1  ;;  %v460_v13 = vmul.f32 %v456_v63, %v455_v4  ;;  %v463_v18 = vmul.f32 1.442695, %v458_v8  ;;  %v1032_v4 = vmov 1966171168  }
 0x100   : > { %v844_v5 = vpop.eup %843  ;;  %v309_v12 = vmul.f32 0.6931472, %v842_v3  ;;  %v313_v16 = vmul.f32 %v312_v9, %v305_v7  ;;  %v465_v21 = vmul.f32 1.442695, %v459_v11  ;;  %861 = vpow2.f32 %v461_v15 }
 0x101   : > { %v311_v14 = vmul.f32 0.6931472, %v844_v5  ;;  %v314_v19 = vmul.f32 %v312_v9, %v307_v10  ;;  %v467_v24 = vmul.f32 1.442695, %v460_v13  ;;  %863 = vpow2.f32 %v463_v18 }
 0x102   : > { %v846_v17 = vpop.eup %845  ;;  %v315_v22 = vmul.f32 %v312_v9, %v309_v12  ;;  %v317_v27 = vmul.f32 1.442695, %v313_v16  ;;  %865 = vpow2.f32 %v465_v21  ;;  %v552_v5 = vunpack.c.l.s4 %v1032_v4 }
 0x103   : > { %v848_v20 = vpop.eup %847  ;;  %v316_v25 = vmul.f32 %v312_v9, %v311_v14  ;;  %v521_v29 = vmul.f32 0.6931472, %v846_v17  ;;  %v319_v31 = vmul.f32 1.442695, %v314_v19  ;;  %867 = vpow2.f32 %v467_v24 }
 0x104   : > { %v850_v23 = vpop.eup %849  ;;  %v523_v32 = vmul.f32 0.6931472, %v848_v20  ;;  %v321_v35 = vmul.f32 1.442695, %v315_v22  ;;  %869 = vpow2.f32 %v317_v27  ;;  %v553_v13 = vunpack.c.0.s8 %v552_v5 }
 0x105   : > { %v852_v26 = vpop.eup %851  ;;  %v525_v36 = vmul.f32 0.6931472, %v850_v23  ;;  %v323_v39 = vmul.f32 1.442695, %v316_v25  ;;  %v529_v43 = vmul.f32 %v528_v28, %v521_v29  ;;  %871 = vpow2.f32 %v319_v31 }
 0x106   : > { %v854_v30 = vpop.eup %853  ;;  %v527_v40 = vmul.f32 0.6931472, %v852_v26  ;;  %v530_v46 = vmul.f32 %v528_v28, %v523_v32  ;;  %873 = vpow2.f32 %v321_v35  ;;  %v555_v14 = vshrl.u32 %v554_v6, 7 }
 0x107   : > { %v856_v34 = vpop.eup %855  ;;  %v377_v37 = vmul.f32 0.6931472, %v854_v30  ;;  %v531_v49 = vmul.f32 %v528_v28, %v525_v36  ;;  %875 = vpow2.f32 %v323_v39  ;;  %v533_v55 = vmul.f32 1.442695, %v529_v43 }
 0x108   : > { %v858_v38 = vpop.eup %857  ;;  %v379_v41 = vmul.f32 0.6931472, %v856_v34  ;;  %v532_v52 = vmul.f32 %v528_v28, %v527_v40  ;;  %v535_v57 = vmul.f32 1.442695, %v530_v46  ;;  %v556_v27 = vsub.s32 %v553_v13, %v555_v14 }
 0x109   : > { %v860_v42 = vpop.eup %859  ;;  %v381_v44 = vmul.f32 0.6931472, %v858_v38  ;;  %v385_v45 = vmul.f32 %v384_v33, %v377_v37  ;;  %v537_v59 = vmul.f32 1.442695, %v531_v49  ;;  %vm576_vm0 = vcmp.lt.s32.totalorder %v554_v6, 512 }
 0x10a   : > { %v383_v47 = vmul.f32 0.6931472, %v860_v42  ;;  %v386_v48 = vmul.f32 %v384_v33, %v379_v41  ;;  %v539_v60 = vmul.f32 1.442695, %v532_v52 }
 0x10b   : > { %v387_v50 = vmul.f32 %v384_v33, %v381_v44  ;;  %v389_v51 = vmul.f32 1.442695, %v385_v45 }
 0x10c   : > { %v388_v53 = vmul.f32 %v384_v33, %v383_v47  ;;  %v391_v54 = vmul.f32 1.442695, %v386_v48 }
 0x10d   : > { %877 = vpow2.f32 %v389_v51  ;;  %v393_v56 = vmul.f32 1.442695, %v387_v50  ;;  %v862_v61 = vpop.eup %861 }
 0x10e   : > { %879 = vpow2.f32 %v391_v54  ;;  %v395_v58 = vmul.f32 1.442695, %v388_v53  ;;  %v864_v62 = vpop.eup %863 }
 0x10f   : > { %881 = vpow2.f32 %v393_v56  ;;  %v866_v63 = vpop.eup %865 }
 0x110   : > { %883 = vpow2.f32 %v395_v58  ;;  %v868_v0 = vpop.eup %867 }
 0x111   : > { %885 = vpow2.f32 %v533_v55  ;;  %v870_v1 = vpop.eup %869 }
 0x112   : > { %887 = vpow2.f32 %v535_v57  ;;  %v872_v2 = vpop.eup %871 }
 0x113   : > { %889 = vpow2.f32 %v537_v59  ;;  %v874_v3 = vpop.eup %873 }
 0x114   : > { %891 = vpow2.f32 %v539_v60  ;;  %v876_v7 = vpop.eup %875 }
 0x11a   : > { %v878_v8 = vpop.eup %877 }
 0x11b   : > { %v880_v9 = vpop.eup %879  ;;  %v397_v10 = vadd.f32 %v878_v8, %v870_v1 }
 0x11c   : > { %v882_v11 = vpop.eup %881  ;;  %v398_v12 = vadd.f32 %v880_v9, %v872_v2 }
 0x11d   : > { %v884_v15 = vpop.eup %883  ;;  %v399_v16 = vadd.f32 %v882_v11, %v874_v3  ;;  %v469_v17 = vadd.f32 %v862_v61, %v397_v10 }
 0x11e   : > { %v886_v18 = vpop.eup %885  ;;  %v400_v19 = vadd.f32 %v884_v15, %v876_v7  ;;  %v470_v20 = vadd.f32 %v864_v62, %v398_v12 }
 0x11f   : > { %v888_v21 = vpop.eup %887  ;;  %v471_v22 = vadd.f32 %v866_v63, %v399_v16  ;;  %v541_v23 = vadd.f32 %v886_v18, %v469_v17 }
 0x120   : > { %v890_v24 = vpop.eup %889  ;;  %v472_v25 = vadd.f32 %v868_v0, %v400_v19  ;;  %v542_v26 = vadd.f32 %v888_v21, %v470_v20 }
 0x121   : > { %v892_v28 = vpop.eup %891  ;;  %v543_v29 = vadd.f32 %v890_v24, %v471_v22 }
 0x122   : > { %v544_v30 = vadd.f32 %v892_v28, %v472_v25  ;;  %v549_v31 = vcombine.low %v541_v23, %v542_v26 }
 0x124   : > { %v550_v32 = vcombine.low %v543_v29, %v544_v30  ;;  %v557_v33 = vrot.slane %v549_v31, %v556_v27 }
 0x126   : > { %v564_v34 = vrot.slane %v550_v32, %v556_v27 }
 0x128   : > { %v565_v35 = vcombine.low %v557_v33, %v564_v34 }
 0x12a   : > { %v572_v36 = vrot.slane %v565_v35, %v556_v27 }
 0x12c   : > { %578 = vst.msk [vmem:[%s240_s25] sm:$0xf] %vm576_vm0, %v572_v36 }
 0x12d   : > { %964 = shalt.err (!%p961_p7)
}
 0x12e   : > { %s965_s6 = scalar_lea.hbm %s592_s26, 64  ;;  %s969_s11 = scalar_lea.hbm %s1230_s4, 128 }
 0x12f   : > { %p966_p10 = scmp.ne.s32.totalorder %s592_s26, %s965_s6  ;;  %p970_p11 = scmp.lt.s32.totalorder %s592_s26, %s1230_s4 }
 0x130   : > { %p971_p12 = scmp.lt.s32.totalorder %s969_s11, %s965_s6 }
 0x131   : > { %p967_p5 = pnand %p966_p10, %p1248_p1 }
 0x132   : > { %p972_p0 = por %p971_p12, %p970_p11 }
 0x133   : > { %p968_p8 = pneg %p967_p5 }
 0x135   : > { %p973_p2 = pnand %p972_p0, %p968_p8 }
 0x137   : > { %976 = shalt.err (!%p973_p2)
}
 0x138   : > { %722 = dma.vmem_to_hbm [thread:$0]  (%p1248_p1), %s595_s7, 64, %s592_s26, %s580_s27  }
 0x139 PF: > { %s606_s14 = sand.u32 1, %s1011_s15   ;;  %p1249_p9 = scmp.ne.s32.totalorder %s1236_s22, 0 }
 0x13a   : > { %p1250_p4 = scmp.ge.s32.totalorder %s1023_s18, 2  ;;  %s607_s24 = scalar_lea.sflag [#allocation4], %s606_s14 }
 0x13c   : > { %p736_p6 = pnand %p1250_p4, %p1249_p9 }
 0x13e   : > { %p737_p13 = pneg %p736_p6 }
 0x140   : > { %1006 = dma.done.wait (%p737_p13), %s607_s24, 64  }
 0x141   : > { %1008 = vsyncadd (%p737_p13), %s607_s24, 4294967232  ;;  %p19_p3 = scmp.ge.s32.totalorder %s1119_s5, 4   ;;  %s1251_s15 = smov %s1015_s16 }
 0x142   : > { %s1252_s16 = smov %s1019_s17  ;;  %s1253_s17 = smov %s1134_s12 }
 0x143   : > { %s1254_s18 = smov %s1119_s5  ;;  %21 = sbr.rel (!%p19_p3) target bundleno = 7 (0x7), region = 90 }
 0x148   :  { %612 = vsyncpa [#allocation3], 1 }
 0x149   :  { %614 = vsyncpa [#allocation3 + $0x1], 1 }
 0x14a   :  { %615 = vsyncpa [#allocation4], 1 }
 0x14b   :  { %617 = vsyncpa [#allocation4 + $0x1], 1 }
 0x14c   :  { %618 = vsyncpa [#allocation5], 1 }
 0x14d   :  { %620 = vsyncpa [#allocation5 + $0x1], 1 }
 0x14e   :  { %621 = vsyncpa [#allocation8], 1 }

</bundles_post_ra>
